<compile_context>
chip_gen: v6e
topology: v6e:2x2x1
jax: 0.10.0
libtpu: 0.0.40
codegen_flags: <defaults>
</compile_context>

<pallas_src>
import functools
import math

import jax
import jax.numpy as jnp
from jax.experimental import pallas as pl
from jax.experimental.pallas import tpu as pltpu


def _quant_kernel(w_ref, up_ref, low_ref, out_ref, scales_ref, zeros_ref=None, *,
                  zero_point: bool, max_int: int, min_int: int):
    """One row-block of groups: (TR, G) weights, (TR, 1) clip factors."""
    # Compute in f32 regardless of storage dtype (supports bf16 weights).
    w = w_ref[...].astype(jnp.float32)                       # (TR, G)
    up = jax.nn.sigmoid(up_ref[...].astype(jnp.float32))     # (TR, 1)
    low = jax.nn.sigmoid(low_ref[...].astype(jnp.float32))   # (TR, 1)

    wmin = jnp.min(w, axis=-1, keepdims=True) * low           # per-group (lane) reduce
    wmax = jnp.max(w, axis=-1, keepdims=True) * up

    if zero_point:
        scales = jnp.clip(wmax - wmin, 1e-5, None) / max_int  # per-group only (R divides)
        inv_scales = 1.0 / scales                              # reused for 2 broadcasts
        zeros = jnp.clip(-jnp.round(wmin * inv_scales), min_int, max_int)
        wq = (jnp.clip(jnp.round(w * inv_scales) + zeros, min_int, max_int)
              - zeros) * scales
        zeros_ref[...] = zeros.astype(zeros_ref.dtype)
    else:
        scales = wmax / max_int                                # per-group only
        inv_scales = 1.0 / scales
        wq = jnp.clip(jnp.round(w * inv_scales), min_int, max_int) * scales

    out_ref[...] = wq.astype(out_ref.dtype)
    scales_ref[...] = scales.astype(scales_ref.dtype)


def uniform_affine_quantize(w, upbound_factor, lowbound_factor, *,
                            group_size: int, zero_point: bool = False,
                            w_bit: int = 4,
                            max_block_elems: int = 2 * 1024 * 1024):
    """Forward pass of UniformAffineQuantizer.

    Returns (w_dequant, scales, zeros) where zeros is None when zero_point=False.
    """
    org_shape = w.shape
    assert org_shape[-1] % group_size == 0
    G = group_size
    w2 = w.reshape(-1, G)
    R = w2.shape[0]
    assert upbound_factor.shape == (R, 1)
    assert lowbound_factor.shape == (R, 1)

    if zero_point:
        max_int, min_int = 2 ** w_bit - 1, 0
    else:
        max_int, min_int = 2 ** (w_bit - 1) - 1, -(2 ** (w_bit - 1))

    # ---- tile-size selection ------------------------------------------------
    # Budget: f32 in + f32 out, each double-buffered -> ~16 * TR * G bytes of
    # VMEM.  max_block_elems = 2M keeps that around 32 MiB: large enough that
    # per-step HBM traffic (8 * TR * G bytes) dwarfs the ~0.35 us/step fixed
    # overhead, and small enough for v7x's 64 MiB physical VMEM.
    tr_cap = max(8, (max_block_elems // max(G, 1)) // 8 * 8)
    if R <= tr_cap or R <= 8:
        # Small problem: single block; block dims == full array dims is legal
        # even when R is not a multiple of 8, and it fits the VMEM budget.
        TR = R
        R_pad = R
    else:
        TR = tr_cap
        R_pad = pl.cdiv(R, TR) * TR

    if R_pad != R:
        pad = R_pad - R
        # Benign padding (avoids inf/NaN/div-by-zero in padded rows); cropped after.
        w2 = jnp.pad(w2, ((0, pad), (0, 0)), constant_values=1.0)
        upbound_factor = jnp.pad(upbound_factor, ((0, pad), (0, 0)))
        lowbound_factor = jnp.pad(lowbound_factor, ((0, pad), (0, 0)))

    grid = (R_pad // TR,)

    block_bytes = TR * G * jnp.dtype(w2.dtype).itemsize
    vmem_limit = int(min(64 * 1024 * 1024,
                         max(32 * 1024 * 1024, 5 * block_bytes)))

    kernel = functools.partial(_quant_kernel, zero_point=zero_point,
                               max_int=max_int, min_int=min_int)

    out_shape = [jax.ShapeDtypeStruct((R_pad, G), w2.dtype),
                 jax.ShapeDtypeStruct((R_pad, 1), w2.dtype)]
    out_specs = [pl.BlockSpec((TR, G), lambda i: (i, 0)),
                 pl.BlockSpec((TR, 1), lambda i: (i, 0))]
    if zero_point:
        out_shape.append(jax.ShapeDtypeStruct((R_pad, 1), w2.dtype))
        out_specs.append(pl.BlockSpec((TR, 1), lambda i: (i, 0)))

    # NOTE: default double-buffering kept; bump pipeline_mode=pl.Buffered(3)
    # on the w specs only if a profile shows exposed DMA at this tile size.
    results = pl.pallas_call(
        kernel,
        out_shape=tuple(out_shape),
        grid_spec=pltpu.PrefetchScalarGridSpec(
            num_scalar_prefetch=0,
            grid=grid,
            in_specs=[
                pl.BlockSpec((TR, G), lambda i: (i, 0)),
                pl.BlockSpec((TR, 1), lambda i: (i, 0)),
                pl.BlockSpec((TR, 1), lambda i: (i, 0)),
            ],
            out_specs=tuple(out_specs),
        ),
        compiler_params=pltpu.CompilerParams(
            dimension_semantics=("parallel",),
            vmem_limit_bytes=vmem_limit),
    )(w2, upbound_factor, lowbound_factor)

    if zero_point:
        w_dq, scales, zeros = results
    else:
        w_dq, scales = results
        zeros = None

    if R_pad != R:
        w_dq = w_dq[:R]
        scales = scales[:R]
        if zeros is not None:
            zeros = zeros[:R]

    w_dq = w_dq.reshape(org_shape)
    return w_dq, scales, zeros


def _reference(w, up, low, *, group_size, zero_point, w_bit):
    """Pure-JAX reference mirroring the PyTorch forward."""
    org_shape = w.shape
    w2 = w.reshape(-1, group_size)
    wmin = jnp.min(w2, axis=-1, keepdims=True)
    wmax = jnp.max(w2, axis=-1, keepdims=True)
    wmax = jax.nn.sigmoid(up) * wmax
    wmin = jax.nn.sigmoid(low) * wmin
    if zero_point:
        max_int, min_int = 2 ** w_bit - 1, 0
        scales = jnp.clip(wmax - wmin, 1e-5, None) / max_int
        zeros = jnp.clip(-jnp.round(wmin / scales), min_int, max_int)
        wq = (jnp.clip(jnp.round(w2 / scales) + zeros, min_int, max_int) - zeros) * scales
    else:
        max_int, min_int = 2 ** (w_bit - 1) - 1, -(2 ** (w_bit - 1))
        scales = wmax / max_int
        zeros = None
        wq = jnp.clip(jnp.round(w2 / scales), min_int, max_int) * scales
    return wq.reshape(org_shape), scales, zeros


if __name__ == "__main__":
    key = jax.random.PRNGKey(0)
    ok = True

    # Case 1: module config shape=(8, 32), group_size=16, w_bit=4, init_value=4.0
    # Case 2: exercises the padding/crop path (R=100 groups, TR=16 via a tiny
    #         max_block_elems override) to validate the large-R code path at
    #         small shapes.
    # Case 3: typical AWQ group_size=128 (fully lane-dense block).
    cases = [
        dict(shape=(8, 32), group_size=16, max_block_elems=2 * 1024 * 1024),
        dict(shape=(25, 64), group_size=16, max_block_elems=256),
        dict(shape=(4, 256), group_size=128, max_block_elems=2 * 1024 * 1024),
    ]

    for cfg in cases:
        shape = cfg["shape"]
        group_size = cfg["group_size"]
        w_bit = 4
        init_value = 4.0

        key, k1 = jax.random.split(key)
        w = jax.random.normal(k1, shape, dtype=jnp.float32)

        dim1 = int(shape[0] * math.ceil(shape[1] / group_size))
        upbound_factor = jnp.ones((dim1, 1), dtype=jnp.float32) * init_value
        lowbound_factor = jnp.ones((dim1, 1), dtype=jnp.float32) * init_value

        for zero_point in (False, True):
            w_dq, scales, zeros = uniform_affine_quantize(
                w, upbound_factor, lowbound_factor,
                group_size=group_size, zero_point=zero_point, w_bit=w_bit,
                max_block_elems=cfg["max_block_elems"])
            jax.block_until_ready(w_dq)
            jax.block_until_ready(scales)

            ref_dq, ref_scales, ref_zeros = _reference(
                w, upbound_factor, lowbound_factor,
                group_size=group_size, zero_point=zero_point, w_bit=w_bit)

            ok &= bool(jnp.allclose(w_dq, ref_dq, atol=1e-5, rtol=1e-5))
            ok &= bool(jnp.allclose(scales, ref_scales, atol=1e-6, rtol=1e-6))
            if zero_point:
                ok &= bool(jnp.allclose(zeros, ref_zeros, atol=1e-6, rtol=1e-6))
            else:
                ok &= zeros is None
            assert w_dq.shape == shape and w_dq.dtype == jnp.float32
            assert scales.shape == (dim1, 1)

    if ok:
        print("KERNEL_OK")
    else:
        print("KERNEL_MISMATCH")
</pallas_src>

<mosaic_0001>
module attributes {stable_mosaic.version = 11 : i64} {
  func.func @_quant_kernel(%arg0: i32, %arg1: memref<16x16xf32, #tpu.memory_space<vmem>>, %arg2: memref<16x1xf32, #tpu.memory_space<vmem>>, %arg3: memref<16x1xf32, #tpu.memory_space<vmem>>, %arg4: memref<16x16xf32, #tpu.memory_space<vmem>>, %arg5: memref<16x1xf32, #tpu.memory_space<vmem>>) attributes {dimension_semantics = [#tpu.dimension_semantics<parallel>], iteration_bounds = array<i64: 1>, scalar_prefetch = 0 : i64, scratch_operands = 0 : i64, tpu.core_type = #tpu.core_type<tc>, window_params = [{transform_indices = @transform_0, window_bounds = array<i64: 16, 16>}, {transform_indices = @transform_1, window_bounds = array<i64: 16, 1>}, {transform_indices = @transform_2, window_bounds = array<i64: 16, 1>}, {transform_indices = @transform_3, window_bounds = array<i64: 16, 16>}, {transform_indices = @transform_4, window_bounds = array<i64: 16, 1>}]} {
    %c0 = arith.constant 0 : index
    %c0_0 = arith.constant 0 : index
    %0 = vector.load %arg1[%c0, %c0_0] : memref<16x16xf32, #tpu.memory_space<vmem>>, vector<16x16xf32>
    %c0_1 = arith.constant 0 : index
    %c0_2 = arith.constant 0 : index
    %1 = vector.load %arg2[%c0_1, %c0_2] : memref<16x1xf32, #tpu.memory_space<vmem>>, vector<16x1xf32>
    %2 = arith.negf %1 : vector<16x1xf32>
    %3 = math.exp %2 : vector<16x1xf32>
    %cst = arith.constant 1.000000e+00 : f32
    %4 = vector.broadcast %cst : f32 to vector<16x1xf32>
    %5 = arith.addf %4, %3 : vector<16x1xf32>
    %6 = arith.divf %4, %5 : vector<16x1xf32>
    %cst_3 = arith.constant dense<0xFF800000> : vector<16xf32>
    %7 = vector.multi_reduction <maximumf>, %0, %cst_3 [1] : vector<16x16xf32> to vector<16xf32>
    %8 = vector.shape_cast %7 : vector<16xf32> to vector<16x1xf32>
    %9 = arith.mulf %8, %6 : vector<16x1xf32>
    %cst_4 = arith.constant 7.000000e+00 : f32
    %10 = vector.broadcast %cst_4 : f32 to vector<16x1xf32>
    %11 = arith.divf %9, %10 : vector<16x1xf32>
    %cst_5 = arith.constant 1.000000e+00 : f32
    %12 = vector.broadcast %cst_5 : f32 to vector<16x1xf32>
    %13 = arith.divf %12, %11 : vector<16x1xf32>
    %14 = vector.broadcast %13 : vector<16x1xf32> to vector<16x16xf32>
    %15 = arith.mulf %0, %14 : vector<16x16xf32>
    %16 = math.roundeven %15 : vector<16x16xf32>
    %c-8_i32 = arith.constant -8 : i32
    %c7_i32 = arith.constant 7 : i32
    %17 = arith.sitofp %c-8_i32 : i32 to f32
    %18 = vector.broadcast %17 : f32 to vector<16x16xf32>
    %19 = arith.maximumf %18, %16 : vector<16x16xf32>
    %20 = arith.sitofp %c7_i32 : i32 to f32
    %21 = vector.broadcast %20 : f32 to vector<16x16xf32>
    %22 = arith.minimumf %21, %19 : vector<16x16xf32>
    %23 = vector.broadcast %11 : vector<16x1xf32> to vector<16x16xf32>
    %24 = arith.mulf %22, %23 : vector<16x16xf32>
    %c0_6 = arith.constant 0 : index
    %c0_7 = arith.constant 0 : index
    %25 = vector.load %arg4[%c0_6, %c0_7] : memref<16x16xf32, #tpu.memory_space<vmem>>, vector<16x16xf32>
    tpu.vector_store %arg4[%c0_6, %c0_7], %24 {strides = array<i32>} : memref<16x16xf32, #tpu.memory_space<vmem>>, vector<16x16xf32>,
    %c0_8 = arith.constant 0 : index
    %c0_9 = arith.constant 0 : index
    %26 = vector.load %arg5[%c0_8, %c0_9] : memref<16x1xf32, #tpu.memory_space<vmem>>, vector<16x1xf32>
    tpu.vector_store %arg5[%c0_8, %c0_9], %11 {strides = array<i32>} : memref<16x1xf32, #tpu.memory_space<vmem>>, vector<16x1xf32>,
    return
  }
  func.func @transform_0(%arg0: i32) -> (i32, i32) {
    %c0_i32 = arith.constant 0 : i32
    %c0_i32_0 = arith.constant 0 : i32
    return %arg0, %c0_i32 : i32, i32
  }
  func.func @transform_1(%arg0: i32) -> (i32, i32) {
    %c0_i32 = arith.constant 0 : i32
    %c0_i32_0 = arith.constant 0 : i32
    return %arg0, %c0_i32 : i32, i32
  }
  func.func @transform_2(%arg0: i32) -> (i32, i32) {
    %c0_i32 = arith.constant 0 : i32
    %c0_i32_0 = arith.constant 0 : i32
    return %arg0, %c0_i32 : i32, i32
  }
  func.func @transform_3(%arg0: i32) -> (i32, i32) {
    %c0_i32 = arith.constant 0 : i32
    %c0_i32_0 = arith.constant 0 : i32
    return %arg0, %c0_i32 : i32, i32
  }
  func.func @transform_4(%arg0: i32) -> (i32, i32) {
    %c0_i32 = arith.constant 0 : i32
    %c0_i32_0 = arith.constant 0 : i32
    return %arg0, %c0_i32 : i32, i32
  }
}

</mosaic_0001>

<bundles_post_ra>
// kernel: tpu_custom_call.1
= control target key start
LH: loop header
LB: loop body
LE: loop exit
PB: predicated region body
PF: predicated region fallthrough
CT: control target
= control target key end

     0   :  { %vm33_vm0 = vcmask 130048   ;;  %s216_s0 = inlined_call_operand.vmem [shape: f32[16,16], index: 0, kind: input, shape index: {}]   ;;  %s217_s1 = inlined_call_operand.vmem [shape: f32[16,1], index: 1, kind: input, shape index: {}]   ;;  %s218_s2 = inlined_call_operand.vmem [shape: f32[16,1], index: 2, kind: input, shape index: {}]   ;;  %s219_s3 = inlined_call_operand.hbm [shape: f32[16,16], index: 3, kind: output, shape index: {0}]   ;;  %s220_s4 = inlined_call_operand.vmem [shape: f32[16,1], index: 4, kind: output, shape index: {1}]  }
   0x1   :  { %v17_v0 = vld [vmem:[%s216_s0] sm:$0xff]  ;;  %v18_v1 = vld [vmem:[%s216_s0 + $0x8] sm:$0xff] }
   0x2   :  { %v34_v2 = vsel %vm33_vm0, %v17_v0, -inf }
   0x3   :  { %35 = vmax.xlane.f32.xlu0 %v34_v2 }
   0x4   :  { %10 = vsyncpa [#allocation3], 0  ;;  %v37_v3 = vsel %vm33_vm0, %v18_v1, -inf  ;;  %v162_v4 = vmov 0   ;;  %v19_v5 = vld [vmem:[%s217_s1] sm:$0xff]  ;;  %v20_v7 = vld [vmem:[%s217_s1 + $0x8] sm:$0xff] }
   0x5   :  { %127 = vset.pattern.permute.xlu0 %v162_v4  ;;  %126 = vset.pattern.permute.xlu1 %v162_v4  ;;  %v104_v6 = vmul.f32 -1.442695, %v19_v5  ;;  %v105_v8 = vmul.f32 -1.442695, %v20_v7  ;;  %vm81_vm1 = vcmask 7168  }
   0x7   :  { %38 = vmax.xlane.f32.xlu0 %v37_v3  ;;  %128 = vpow2.f32 %v104_v6 }
   0x8   :  { %130 = vpow2.f32 %v105_v8 }
  0x14   :  { %v129_v9 = vpop.eup %128 }
  0x15   :  { %v27_v10 = vadd.f32 1.0, %v129_v9  ;;  %v131_v11 = vpop.eup %130 }
  0x16   :  { %v28_v12 = vadd.f32 1.0, %v131_v11 }
  0x17   :  { %132 = vrcp.f32 %v27_v10 }
  0x18   :  { %134 = vrcp.f32 %v28_v12 }
  0x24   :  { %v133_v13 = vpop.eup %132 }
  0x25   :  { %v135_v16 = vpop.eup %134 }
  0x8c   :  { %v36_v14 = vpop.xlane.xlu0 %35 }
  0x8d   :  { %v40_v15 = vmul.f32 %v133_v13, %v36_v14 }
  0x8f   :  { %v43_v17 = vmul.f32 0.14285715, %v40_v15 }
  0x90   :  { %v39_v18 = vpop.xlane.xlu0 %38 }
  0x91   :  { %136 = vrcp.f32 %v43_v17  ;;  %82 = vst.msk [vmem:[%s220_s4] sm:$0xff] %vm81_vm1, %v43_v17  ;;  %v41_v19 = vmul.f32 %v135_v16, %v39_v18  ;;  %69 = vperm.xlu0 %127, %v43_v17  }
  0x93   :  { %v44_v20 = vmul.f32 0.14285715, %v41_v19 }
  0x95   :  { %138 = vrcp.f32 %v44_v20  ;;  %83 = vst.msk [vmem:[%s220_s4 + $0x8] sm:$0xff] %vm81_vm1, %v44_v20  ;;  %s163_s4 = smov [#allocation2]  }
  0x96   :  { %s89_s24 = sshll.u32 %s163_s4, 4  ;;  %s90_s24 = int_to_ptr.vmem [resolvable:$true] %s89_s24 }
  0x97   :  { %s140_s25 = scalar_lea.vmem %s90_s24, 256  ;;  %p145_p1 = scmp.lt.s32.totalorder %s90_s24, %s90_s24 }
  0x98   :  { %p141_p0 = scmp.ne.s32.totalorder %s90_s24, %s140_s25  ;;  %p146_p2 = scmp.lt.s32.totalorder %s140_s25, %s140_s25 }
  0x9a   :  { %p147_p3 = por %p146_p2, %p145_p1 }
  0x9c   :  { %p148_p4 = pnand %p147_p3, %p141_p0 }
  0x9e   :  { %v137_v21 = vpop.eup %136 }
  0x9f   :  { %51 = vperm.xlu1 %126, %v137_v21  }
  0xa2   :  { %v139_v22 = vpop.eup %138 }
  0xa3   :  { %56 = vperm.xlu1 %126, %v139_v22  }
  0xa7   :  { %74 = vperm.xlu1 %126, %v44_v20  }
 0x10c   :  { %v70_v42 = vpop.permute.xlu0 %69 }
 0x11a   :  { %v52_v23 = vpop.permute.xlu1 %51 }
 0x11b   :  { %v59_v24 = vmul.f32 %v52_v23, %v17_v0 }
 0x11d   :  { %v108_v25 = vcvt.f32.s32 %v59_v24  ;;  %v106_v29 = vand.u32 2147483647, %v59_v24  ;;  %v111_v31 = vand.u32 2147483648, %v59_v24 }
 0x11e   :  { %v57_v26 = vpop.permute.xlu1 %56 }
 0x11f   :  { %v109_v27 = vcvt.s32.f32 %v108_v25  ;;  %v60_v28 = vmul.f32 %v57_v26, %v18_v1  ;;  %vm107_vm2 = vcmp.lt.f32.partialorder %v106_v29, 8388608.0 }
 0x121   :  { %v110_v30 = vand.u32 2147483647, %v109_v27  ;;  %v116_v32 = vcvt.f32.s32 %v60_v28  ;;  %v114_v35 = vand.u32 2147483647, %v60_v28  ;;  %v119_v38 = vand.u32 2147483648, %v60_v28 }
 0x122   :  { %v75_v47 = vpop.permute.xlu1 %74 }
 0x123   :  { %v112_v33 = vor.u32 %v111_v31, %v110_v30  ;;  %v117_v34 = vcvt.s32.f32 %v116_v32  ;;  %vm115_vm3 = vcmp.lt.f32.partialorder %v114_v35, 8388608.0 }
 0x125   :  { %v113_v36 = vsel %vm107_vm2, %v112_v33, %v59_v24  ;;  %v118_v37 = vand.u32 2147483647, %v117_v34 }
 0x126   :  { %v63_v39 = vmax.f32 %v113_v36, -8.0 }
 0x127   :  { %v120_v40 = vor.u32 %v119_v38, %v118_v37 }
 0x128   :  { %v65_v41 = vmin.f32 %v63_v39, 7.0 }
 0x129   :  { %v121_v43 = vsel %vm115_vm3, %v120_v40, %v60_v28 }
 0x12a   :  { %v64_v44 = vmax.f32 %v121_v43, -8.0  ;;  %v77_v45 = vmul.f32 %v70_v42, %v65_v41 }
 0x12c   :  { %v66_v46 = vmin.f32 %v64_v44, 7.0  ;;  %79 = vst.msk [vmem:[#allocation2] sm:$0xff] %vm33_vm0, %v77_v45 }
 0x12e   :  { %v78_v48 = vmul.f32 %v75_v47, %v66_v46 }
 0x130   :  { %80 = vst.msk [vmem:[#allocation2 + $0x8] sm:$0xff] %vm33_vm0, %v78_v48 }
 0x131   :  { %151 = shalt.err (!%p148_p4)
}
 0x132   :  { %s164_s26 = smov 128   ;;  %s165_s27 = smov 8  }
 0x133   :  { %95 = dma.vmem_to_hbm [thread:$0]  %s90_s24, 256, %s219_s3, [#allocation3], %s164_s26, %s164_s26, %s165_s27  }
 0x134   :  { %160 = dma.done.wait [#allocation3], 256  }
 0x135   :  { %161 = vsyncadd [#allocation3], 4294967040 }
 0x136   :  { %103 = vsyncpa [#allocation3], 1 }

</bundles_post_ra>
